<compile_context>
chip_gen: v6e
topology: v6e:2x2x1
jax: 0.10.0
libtpu: 0.0.40
codegen_flags: <defaults>
</compile_context>

<pallas_src>
import jax
import jax.numpy as jnp
from jax import lax
from jax.experimental import pallas as pl
from jax.experimental.pallas import tpu as pltpu


def _masked_sqdist_kernel(nf_ref, p1_ref, p2_ref, d2_ref):
    """Accumulate masked per-row squared differences into a (rb, 128) block."""
    t = pl.program_id(1)                     # time-tile index ("arbitrary")
    rb, tt = p1_ref.shape                    # static block shape
    n_chunks = tt // 128                     # tt is always a multiple of 128

    # Zero the resident per-row accumulator on the first time tile.
    @pl.when(t == 0)
    def _():
        d2_ref[...] = jnp.zeros_like(d2_ref)

    # Native-dtype loads, f32 math on the VPU.
    diff = p1_ref[...].astype(jnp.float32) - p2_ref[...].astype(jnp.float32)
    sq = diff * diff                                                # (rb, tt)

    # One broadcast compare builds the whole mask: (1, tt) iota vs (rb, 1)
    # per-row frame counts.  Select (not multiply) so ragged-tile OOB garbage
    # (possibly NaN/Inf) never leaks into the accumulator.
    t_idx = t * tt + lax.broadcasted_iota(jnp.int32, (1, tt), 1)
    mask = t_idx < nf_ref[...]                                      # (rb, tt)
    masked = jnp.where(mask, sq, 0.0)

    # Fold time lanes into 128-wide chunks with static lane-aligned slices
    # (pure VPU adds, no XLU) and do one RMW of the lane-dense output block.
    acc = masked[:, 0:128]
    for c in range(1, n_chunks):
        acc = acc + masked[:, c * 128:(c + 1) * 128]
    d2_ref[...] += acc


def _vmem_budgets():
    """(vmem_limit_bytes, input tile budget) sized for the local TPU gen."""
    cap = None
    try:
        cap = pltpu.get_tpu_info().vmem_capacity_bytes
    except Exception:
        cap = None
    if not cap:
        cap = 64 * 1024 * 1024               # conservative: v7x per-TC VMEM
    limit = min((3 * int(cap)) // 4, 64 * 1024 * 1024)
    limit = max(limit, 16 * 1024 * 1024)
    return limit, limit // 2                 # inputs (2 x double-buffered)


def _choose_row_block(rows):
    """rows is a multiple of 8; prefer >=2 blocks on the parallel axis."""
    for rb in (512, 256, 128, 64, 32, 16, 8):
        if rb < rows and rows % rb == 0:
            return rb
    return rows


def _choose_time_tile(rb, T, itemsize, budget_bytes, max_tile=8192):
    """Largest lane-aligned time tile with 2 inputs x 2 buffers under budget."""
    t_full = ((T + 127) // 128) * 128
    bytes_per_t = 4 * rb * itemsize          # 2 inputs x 2 pipeline buffers
    max_t = budget_bytes // max(bytes_per_t, 1)
    max_t = max(128, (max_t // 128) * 128)
    return min(t_full, max_t, max_tile)


def masked_contrast_loss(pred1, pred2, labels, n_frames, margin=0.99, *,
                         time_tile=None):
    B, C, T = pred1.shape
    assert pred2.shape == (B, C, T)
    R = B * C
    R_pad = ((R + 7) // 8) * 8               # sublane-dim multiple of 8

    # Flatten batch*channel onto the sublane axis (free row-major reshape);
    # full bf16 sublane packing and a single 2-D tiling problem.
    p1 = pred1.reshape(R, T)
    p2 = pred2.reshape(R, T)

    # Clamp frame counts to T (matches PyTorch `pred[i, :, :frame]` clipping);
    # also guarantees ragged last-tile padding is always masked out.
    nf = jnp.minimum(n_frames.astype(jnp.int32), T)
    nf_rows = jnp.repeat(nf, C)
    if R_pad != R:
        pad = R_pad - R
        p1 = jnp.pad(p1, ((0, pad), (0, 0)))
        p2 = jnp.pad(p2, ((0, pad), (0, 0)))
        nf_rows = jnp.pad(nf_rows, (0, pad))  # zero frames -> fully masked rows
    nf_rows = nf_rows.reshape(R_pad, 1)

    rb = _choose_row_block(R_pad)
    n_b = R_pad // rb

    itemsize = jnp.dtype(pred1.dtype).itemsize
    vmem_limit, input_budget = _vmem_budgets()
    if time_tile is None:
        tt = _choose_time_tile(rb, T, itemsize, input_budget)
    else:
        assert time_tile > 0 and time_tile % 128 == 0
        tt = time_tile
    n_t = pl.cdiv(T, tt)

    cost = pl.CostEstimate(
        flops=5 * R * T,
        transcendentals=0,
        bytes_accessed=(p1.size + p2.size) * itemsize + R_pad * (128 + 1) * 4,
    )

    d2_tile = pl.pallas_call(
        _masked_sqdist_kernel,
        out_shape=jax.ShapeDtypeStruct((R_pad, 128), jnp.float32),
        grid_spec=pltpu.PrefetchScalarGridSpec(
            num_scalar_prefetch=0,
            grid=(n_b, n_t),
            in_specs=[
                pl.BlockSpec((rb, 1), lambda b, t: (b, 0)),    # frame counts
                pl.BlockSpec((rb, tt), lambda b, t: (b, t)),   # pred1 rows
                pl.BlockSpec((rb, tt), lambda b, t: (b, t)),   # pred2 rows
            ],
            out_specs=pl.BlockSpec((rb, 128), lambda b, t: (b, 0)),
        ),
        compiler_params=pltpu.CompilerParams(
            dimension_semantics=("parallel", "arbitrary"),
            vmem_limit_bytes=vmem_limit),
        cost_estimate=cost,
    )(nf_rows, p1, p2)

    # O(B) epilogue in plain JAX: lane + channel reduce, sqrt, hinge, mean.
    d2 = d2_tile[:R].reshape(B, C, 128).sum(axis=(1, 2))
    d = jnp.sqrt(d2)
    loss = jnp.where(labels != 0, d2, jnp.maximum(margin - d, 0.0) ** 2)
    return jnp.mean(loss)


def _reference_loss(pred1, pred2, labels, n_frames, margin=0.99):
    B, C, T = pred1.shape
    mask = jnp.arange(T)[None, None, :] < n_frames[:, None, None]
    d2 = jnp.sum(jnp.where(mask, (pred1 - pred2) ** 2, 0.0), axis=(1, 2))
    d = jnp.sqrt(d2)
    loss = jnp.where(labels != 0, d2, jnp.maximum(margin - d, 0.0) ** 2)
    return jnp.mean(loss)


if __name__ == "__main__":
    key = jax.random.PRNGKey(0)
    k1, k2, k3, k4 = jax.random.split(key, 4)

    # --- Test 1: f32, multi-step time accumulation (forced time_tile=128). ---
    B, C, T = 8, 8, 384
    pred1 = jax.random.normal(k1, (B, C, T), dtype=jnp.float32) * 0.01
    pred2 = jax.random.normal(k2, (B, C, T), dtype=jnp.float32) * 0.01
    labels = jnp.array([1, 0, 1, 0, 0, 1, 0, 1], dtype=jnp.int32)
    n_frames = jnp.array([384, 64, 37, 300, 500, 128, 1, 384], dtype=jnp.int32)

    loss = masked_contrast_loss(pred1, pred2, labels, n_frames, margin=0.99,
                                time_tile=128)
    loss = jax.block_until_ready(loss)
    ref = _reference_loss(pred1, pred2, labels, n_frames, margin=0.99)
    assert jnp.allclose(loss, ref, rtol=1e-4, atol=1e-6), (loss, ref)

    # --- Test 2: native bf16 inputs, default (auto) tiling. -----------------
    p1b, p2b = pred1.astype(jnp.bfloat16), pred2.astype(jnp.bfloat16)
    loss_bf16 = masked_contrast_loss(p1b, p2b, labels, n_frames, margin=0.99)
    loss_bf16 = jax.block_until_ready(loss_bf16)
    ref_bf16 = _reference_loss(p1b.astype(jnp.float32), p2b.astype(jnp.float32),
                               labels, n_frames, margin=0.99)
    assert jnp.allclose(loss_bf16, ref_bf16, rtol=1e-4, atol=1e-6), (
        loss_bf16, ref_bf16)

    # --- Test 3: odd shapes (B*C not a multiple of 8, ragged last tile). ----
    B3, C3, T3 = 3, 5, 200
    q1 = jax.random.normal(k3, (B3, C3, T3), dtype=jnp.float32) * 0.02
    q2 = jax.random.normal(k4, (B3, C3, T3), dtype=jnp.float32) * 0.02
    labels3 = jnp.array([1, 0, 0], dtype=jnp.int32)
    n_frames3 = jnp.array([200, 50, 0], dtype=jnp.int32)
    loss3 = masked_contrast_loss(q1, q2, labels3, n_frames3, margin=0.99,
                                 time_tile=128)
    loss3 = jax.block_until_ready(loss3)
    ref3 = _reference_loss(q1, q2, labels3, n_frames3, margin=0.99)
    assert jnp.allclose(loss3, ref3, rtol=1e-4, atol=1e-6), (loss3, ref3)

    print("KERNEL_OK")
</pallas_src>

<mosaic_0001>
module attributes {stable_mosaic.version = 11 : i64} {
  func.func @_masked_sqdist_kernel(%arg0: i32, %arg1: i32, %arg2: memref<32x1xi32, #tpu.memory_space<vmem>>, %arg3: memref<32x128xf32, #tpu.memory_space<vmem>>, %arg4: memref<32x128xf32, #tpu.memory_space<vmem>>, %arg5: memref<32x128xf32, #tpu.memory_space<vmem>>) attributes {dimension_semantics = [#tpu.dimension_semantics<parallel>, #tpu.dimension_semantics<arbitrary>], iteration_bounds = array<i64: 2, 3>, scalar_prefetch = 0 : i64, scratch_operands = 0 : i64, tpu.core_type = #tpu.core_type<tc>, window_params = [{transform_indices = @transform_0, window_bounds = array<i64: 32, 1>}, {transform_indices = @transform_1, window_bounds = array<i64: 32, 128>}, {transform_indices = @transform_2, window_bounds = array<i64: 32, 128>}, {transform_indices = @transform_3, window_bounds = array<i64: 32, 128>}]} {
    %c0_i32 = arith.constant 0 : i32
    %0 = arith.cmpi eq, %arg1, %c0_i32 : i32
    %1 = arith.extui %0 : i1 to i32
    %c0_i32_0 = arith.constant 0 : i32
    %2 = arith.cmpi ne, %1, %c0_i32_0 : i32
    scf.if %2 {
      %cst_10 = arith.constant 0.000000e+00 : f32
      %20 = vector.broadcast %cst_10 : f32 to vector<32x128xf32>
      %c0_11 = arith.constant 0 : index
      %c0_12 = arith.constant 0 : index
      %21 = vector.load %arg5[%c0_11, %c0_12] : memref<32x128xf32, #tpu.memory_space<vmem>>, vector<32x128xf32>
      tpu.vector_store %arg5[%c0_11, %c0_12], %20 {strides = array<i32>} : memref<32x128xf32, #tpu.memory_space<vmem>>, vector<32x128xf32>,
    } else {
    }
    %c0 = arith.constant 0 : index
    %c0_1 = arith.constant 0 : index
    %3 = vector.load %arg3[%c0, %c0_1] : memref<32x128xf32, #tpu.memory_space<vmem>>, vector<32x128xf32>
    %c0_2 = arith.constant 0 : index
    %c0_3 = arith.constant 0 : index
    %4 = vector.load %arg4[%c0_2, %c0_3] : memref<32x128xf32, #tpu.memory_space<vmem>>, vector<32x128xf32>
    %5 = arith.subf %3, %4 : vector<32x128xf32>
    %6 = arith.mulf %5, %5 : vector<32x128xf32>
    %c128_i32 = arith.constant 128 : i32
    %7 = arith.muli %arg1, %c128_i32 : i32
    %8 = tpu.iota {dimensions = array<i32: 1>} : vector<1x128xi32>
    %9 = vector.broadcast %7 : i32 to vector<1x128xi32>
    %10 = arith.addi %9, %8 : vector<1x128xi32>
    %c0_4 = arith.constant 0 : index
    %c0_5 = arith.constant 0 : index
    %11 = vector.load %arg2[%c0_4, %c0_5] : memref<32x1xi32, #tpu.memory_space<vmem>>, vector<32x1xi32>
    %12 = vector.broadcast %10 : vector<1x128xi32> to vector<32x128xi32>
    %13 = vector.broadcast %11 : vector<32x1xi32> to vector<32x128xi32>
    %14 = arith.cmpi slt, %12, %13 : vector<32x128xi32>
    %cst = arith.constant 0.000000e+00 : f32
    %15 = vector.broadcast %cst : f32 to vector<32x128xf32>
    %16 = arith.select %14, %6, %15 : vector<32x128xi1>, vector<32x128xf32>
    %c0_6 = arith.constant 0 : index
    %c0_7 = arith.constant 0 : index
    %17 = vector.load %arg5[%c0_6, %c0_7] : memref<32x128xf32, #tpu.memory_space<vmem>>, vector<32x128xf32>
    %18 = arith.addf %17, %16 : vector<32x128xf32>
    %c0_8 = arith.constant 0 : index
    %c0_9 = arith.constant 0 : index
    %19 = vector.load %arg5[%c0_8, %c0_9] : memref<32x128xf32, #tpu.memory_space<vmem>>, vector<32x128xf32>
    tpu.vector_store %arg5[%c0_8, %c0_9], %18 {strides = array<i32>} : memref<32x128xf32, #tpu.memory_space<vmem>>, vector<32x128xf32>,
    return
  }
  func.func @transform_0(%arg0: i32, %arg1: i32) -> (i32, i32) {
    %c0_i32 = arith.constant 0 : i32
    %c0_i32_0 = arith.constant 0 : i32
    return %arg0, %c0_i32 : i32, i32
  }
  func.func @transform_1(%arg0: i32, %arg1: i32) -> (i32, i32) {
    %c0_i32 = arith.constant 0 : i32
    return %arg0, %arg1 : i32, i32
  }
  func.func @transform_2(%arg0: i32, %arg1: i32) -> (i32, i32) {
    %c0_i32 = arith.constant 0 : i32
    return %arg0, %arg1 : i32, i32
  }
  func.func @transform_3(%arg0: i32, %arg1: i32) -> (i32, i32) {
    %c0_i32 = arith.constant 0 : i32
    %c0_i32_0 = arith.constant 0 : i32
    return %arg0, %c0_i32 : i32, i32
  }
}

</mosaic_0001>

<bundles_post_ra>
// kernel: tpu_custom_call.1
= control target key start
LH: loop header
LB: loop body
LE: loop exit
PB: predicated region body
PF: predicated region fallthrough
CT: control target
= control target key end

     0   :  { %s1092_s0 = inlined_call_operand.vmem [shape: s32[64,1], index: 0, kind: input, shape index: {}]   ;;  %s1093_s1 = inlined_call_operand.hbm [shape: f32[64,384], index: 1, kind: input, shape index: {}]   ;;  %s1094_s2 = inlined_call_operand.hbm [shape: f32[64,384], index: 2, kind: input, shape index: {}]   ;;  %s1095_s3 = inlined_call_operand.hbm [shape: f32[64,128], index: 3, kind: output, shape index: {}]  }
   0x1   :  { %1102 = sst [smem:[#allocation18_spill]] %s1093_s1 }
   0x2   :  { %8 = vsyncpa [#allocation3], 0 }
   0x3   :  { %10 = vsyncpa [#allocation3 + $0x1], 0 }
   0x4   :  { %11 = vsyncpa [#allocation6], 0 }
   0x5   :  { %13 = vsyncpa [#allocation6 + $0x1], 0 }
   0x6   :  { %14 = vsyncpa [#allocation4], 0 }
   0x7   :  { %16 = vsyncpa [#allocation4 + $0x1], 0  ;;  %s832_s12 = smov 0   ;;  %s834_s13 = smov 0  }
   0x8   :  { %s836_s14 = smov 0   ;;  %s838_s15 = smov 0  }
   0x9   :  { %s840_s16 = smov 0   ;;  %s842_s17 = smov 0  }
   0xa   :  { %s844_s18 = smov 0   ;;  %s846_s19 = smov 0  }
   0xb   :  { %s848_s20 = smov 0   ;;  %s850_s21 = smov 0  }
   0xc   :  { %s852_s22 = smov 0  }
   0xd LB: > { %1103 = sst [smem:[#allocation11_spill]] %s780_s17  ;;  %s476_s23 = sadd.s32 4294967295, %s800_s22   ;;  %s800_s22 = sphi %s852_s22, %s22_s22   ;;  %s796_s21 = sphi %s850_s21, %s1124_s21   ;;  %s792_s20 = sphi %s848_s20, %s1123_s20   ;;  %s788_s19 = sphi %s846_s19, %s1122_s19   ;;  %s784_s18 = sphi %s844_s18, %s1121_s18   ;;  %s780_s17 = sphi %s842_s17, %s1120_s17   ;;  %s776_s16 = sphi %s840_s16, %s1129_s16   ;;  %s772_s15 = sphi %s838_s15, %s1128_s15   ;;  %s768_s14 = sphi %s836_s14, %s1127_s14   ;;  %s764_s13 = sphi %s834_s13, %s1126_s13   ;;  %s760_s12 = sphi %s832_s12, %s1125_s12  }
   0xe   : > { %1104 = sst [smem:[#allocation12_spill]] %s792_s20  ;;  %s477_s24 = sadd.s32 4294967294, %s800_s22  }
   0xf   : > { %1105 = sst [smem:[#allocation13_spill]] %s796_s21  ;;  %s31_s25 = sadd.s32 1, %s792_s20 }
  0x10   : > { %s34_s26 = sadd.s32 1, %s796_s21  ;;  %p32_p0 = scmp.ge.s32.totalorder %s31_s25, 3 }
  0x11   : > { %s69_s27 = sadd.s32 1, %s780_s17  ;;  %p76_p1 = scmp.ne.s32.totalorder %s780_s17, %s776_s16 }
  0x12   : > { %p77_p2 = scmp.eq.s32.totalorder %s800_s22, 0  ;;  %s1131_s25 = smov (%p32_p0, %s31_s25), 0 }
  0x13   : > { %1106 = sst [smem:[#allocation14_spill]] %s1131_s25  ;;  %s1133_s26 = smov (!%p32_p0, %s34_s26), %s796_s21 }
  0x14   : > { %s65_s28 = ssub.s32 %s792_s20, %s1131_s25  ;;  %p898_p3 = por %p77_p2, %p76_p1 }
  0x15   : > { %p36_p4 = scmp.ge.s32.totalorder %s1133_s26, 2  ;;  %p82_p5 = scmp.ne.s32.totalorder %s776_s16, %s772_s15 }
  0x16   : > { %p83_p6 = scmp.eq.s32.totalorder %s476_s23, 0  ;;  %s123_s30 = sadd.s32 1, %s768_s14 }
  0x17   : > { %s1135_s26 = smov (%p36_p4, %s1133_s26), 0  ;;  %p133_p8 = scmp.ne.s32.totalorder %s768_s14, %s764_s13 }
  0x18   : > { %1108 = sst [smem:[#allocation15_spill]] %s1135_s26  ;;  %p906_p7 = por %p83_p6, %p82_p5 }
  0x19   : > { %s64_s5 = ssub.s32 %s796_s21, %s1135_s26  ;;  %p134_p9 = scmp.eq.s32.totalorder %s476_s23, 5 }
  0x1a   : > { %s66_s6 = sor.u32 %s65_s28, %s64_s5  ;;  %p121_p10 = scmp.eq.s32.totalorder %s64_s5, 0 }
  0x1b   : > { %p67_p11 = scmp.eq.s32.totalorder %s66_s6, 0  ;;  %p914_p12 = por %p134_p9, %p133_p8 }
  0x1c   : > { %s919_s8 = scalar_select %p121_p10, %s768_s14, %s123_s30  }
  0x1d   : > { %s922_s9 = scalar_select %p67_p11, %s780_s17, %s69_s27  }
  0x1e   : > { %1111 = sst [smem:[#allocation16_spill]] %s919_s8  ;;  %p139_p13 = scmp.ne.s32.totalorder %s764_s13, %s760_s12 }
  0x1f   : > { %1112 = sst [smem:[#allocation17_spill]] %s922_s9  ;;  %p140_p0 = scmp.eq.s32.totalorder %s477_s24, 5 }
  0x20   : > { %p521_p1 = scmp.lt.s32.totalorder %s800_s22, 6  ;;  %s932_s11 = sand.u32 1, %s780_s17  }
  0x21   : > { %p927_p2 = por %p140_p0, %p139_p13  ;;  %s1099_s15 = sshll.u32 %s932_s11, 5 }
  0x22   : > { %s502_s23 = smul.u32 12, %s796_s21  ;;  %s173_s28 = scalar_lea.vmem [#allocation2], %s1099_s15 }
  0x23   : > { %s182_s30 = sshll.u32 %s173_s28, 4  ;;  %p940_p4 = pnand %p521_p1, %p898_p3  ;;  %s183_s30 = int_to_ptr.vmem [resolvable:$true] %s182_s30 }
  0x24   : > { %s179_s24 = sadd.s32 %s792_s20, %s502_s23  ;;  %s1115_s1 = sld [smem:[#allocation18_spill]] }
  0x25   : > { %s483_s5 = sshll.u32 %s179_s24, 7  ;;  %s170_s9 = scalar_lea.sflag [#allocation3], %s932_s11 }
  0x26   : > { %p622_p5 = pneg %p940_p4  ;;  %s633_s21 = scalar_lea.vmem %s183_s30, 512 }
  0x27   : > { %p634_p6 = scmp.ne.s32.totalorder %s183_s30, %s633_s21  ;;  %s802_s29 = smov [#allocation2]  }
  0x28   : > { %s638_s28 = sshll.u32 %s802_s29, 4  ;;  %s639_s28 = int_to_ptr.vmem [resolvable:$false] %s638_s28 }
  0x29   : > { %p636_p3 = pnand %p634_p6, %p622_p5  ;;  %s640_s15 = scalar_lea.vmem %s639_s28, 1024 }
  0x2a   : > { %s181_s25 = scalar_lea.hbm %s1115_s1, %s483_s5  ;;  %p641_p9 = scmp.lt.s32.totalorder %s183_s30, %s639_s28 }
  0x2b   : > { %p637_p8 = pneg %p636_p3  ;;  %p642_p10 = scmp.lt.s32.totalorder %s640_s15, %s633_s21 }
  0x2d   : > { %p643_p11 = por %p642_p10, %p641_p9 }
  0x2f   : > { %p644_p13 = pnand %p643_p11, %p637_p8 }
  0x31   : > { %647 = shalt.err (!%p644_p13)
}
  0x32   : > { %s803_s26 = smov 384   ;;  %s804_s23 = smov 128  }
  0x33   : > { %s805_s24 = smov 8   ;;  %p488_p0 = scmp.ge.s32.totalorder %s800_s22, 1 }
  0x34   : > { %513 = dma.hbm_to_vmem [thread:$0]  (!%p940_p4), %s181_s25, 512, %s183_s30, %s170_s9, %s803_s26, %s804_s23, %s805_s24  }
  0x35   : > { %p213_p1 = scmp.lt.s32.totalorder %s800_s22, 7  ;;  %s204_s29 = scalar_lea.hbm %s1094_s2, %s483_s5 }
  0x36   : > { %s1117_s28 = sshll.u32 %s932_s11, 5  ;;  %s193_s17 = scalar_lea.sflag [#allocation6], %s932_s11 }
  0x37   : > { %p959_p6 = pnand %p488_p0, %p213_p1  ;;  %s196_s1 = scalar_lea.vmem [#allocation5], %s1117_s28 }
  0x38   : > { %s205_s20 = sshll.u32 %s196_s1, 4  ;;  %s806_s25 = smov [#allocation5]   ;;  %s206_s20 = int_to_ptr.vmem [resolvable:$true] %s205_s20 }
  0x39   : > { %s661_s8 = scalar_lea.vmem %s206_s20, 512  ;;  %s666_s9 = sshll.u32 %s806_s25, 4  ;;  %s667_s9 = int_to_ptr.vmem [resolvable:$false] %s666_s9 }
  0x3a   : > { %p662_p3 = scmp.ne.s32.totalorder %s206_s20, %s661_s8  ;;  %s668_s30 = scalar_lea.vmem %s667_s9, 1024 }
  0x3b   : > { %p669_p10 = scmp.lt.s32.totalorder %s206_s20, %s667_s9  ;;  %p670_p11 = scmp.lt.s32.totalorder %s668_s30, %s661_s8 }
  0x3c   : > { %p664_p8 = pnand %p662_p3, %p622_p5 }
  0x3d   : > { %p671_p13 = por %p670_p11, %p669_p10 }
  0x3e   : > { %p665_p9 = pneg %p664_p8 }
  0x40   : > { %p672_p0 = pnand %p671_p13, %p665_p9 }
  0x42   : > { %675 = shalt.err (!%p672_p0)
}
  0x43   : > { %516 = dma.hbm_to_vmem [thread:$0]  (!%p940_p4), %s204_s29, 512, %s206_s20, %s193_s17, %s803_s26, %s804_s23, %s805_s24  }
  0x44   : > { %217 = sbr.rel (%p959_p6) target bundleno = 236 (0xec), region = 32  ;;  %s219_s1 = sand.u32 (!%p959_p6), 1, %s776_s16  }
  0x45   : > { %s489_s11 = sshll.u32 (!%p959_p6), %s219_s1, 5  ;;  %s220_s5 = scalar_lea.sflag (!%p959_p6), [#allocation3], %s219_s1 }
  0x46   : > { %s978_s21 = scalar_lea.vmem (!%p959_p6), [#allocation2], %s489_s11 }
  0x49   : > { %747 = dma.done.wait (%p906_p7), %s220_s5, 512  }
  0x4a   : > { %749 = vsyncadd (%p906_p7), %s220_s5, 4294966784  ;;  %s229_s8 = scalar_lea.sflag [#allocation6], %s219_s1  ;;  %s984_s27 = scalar_lea.vmem [#allocation5], %s489_s11 }
  0x4b   : > { %751 = dma.done.wait (%p906_p7), %s229_s8, 512  }
  0x4c   : > { %753 = vsyncadd (%p906_p7), %s229_s8, 4294966784  ;;  %s262_s17 = sand.u32 1, %s764_s13   ;;  %s492_s20 = sshll.u32 %s788_s19, 2 }
  0x4d   : > { %s491_s26 = sshll.u32 %s262_s17, 5  ;;  %p266_p4 = scmp.lt.s32.totalorder %s492_s20, 7 }
  0x4e   : > { %s997_s29 = scalar_lea.vmem [#allocation7], %s491_s26  ;;  %p494_p5 = scmp.ne.s32.totalorder %s784_s18, 0 }
  0x4f   : > { %s1137_s20 = smov (!%p266_p4, %s492_s20), 7 }
  0x50   : > { %s493_s23 = sshll.u32 %s1137_s20, 3  ;;  %277 = sbr.rel (%p494_p5) target bundleno = 88 (0x58), region = 44 }
  0x51   : > { %s269_s15 = scalar_lea.vmem %s1092_s0, %s493_s23 }
  0x55   : > { %v807_v0 = vmov 0.0  }
  0x56   : > { %278 = vst [vmem:[%s997_s29] sm:$0xff] %v807_v0  ;;  %279 = vst [vmem:[%s997_s29 + $0x8] sm:$0xff] %v807_v0 }
  0x57   : > { %280 = vst [vmem:[%s997_s29 + $0x10] sm:$0xff] %v807_v0  ;;  %281 = vst [vmem:[%s997_s29 + $0x18] sm:$0xff] %v807_v0 }
  0x58 PF: > { %v305_v1 = vld [vmem:[%s269_s15 + $0x10] sm:$0xff]  ;;  %v303_v2 = vld [vmem:[%s269_s15] sm:$0xff]  ;;  %v808_v3 = vmov 0   ;;  %v306_v4 = vld [vmem:[%s269_s15 + $0x18] sm:$0xff]  ;;  %v299_v6 = vlaneseq  ;;  %s495_s4 = sshll.u32 %s784_s18, 7  ;;  %s501_s18 = sshll.u32 %s788_s19, 9 }
  0x59   : > { %619 = vset.pattern.permute.xlu1 %v808_v3  ;;  %618 = vset.pattern.permute.xlu0 %v808_v3  ;;  %v304_v5 = vld [vmem:[%s269_s15 + $0x8] sm:$0xff]  ;;  %v284_v7 = vld [vmem:[%s978_s21 + $0x10] sm:$0xff]  ;;  %v282_v9 = vld [vmem:[%s978_s21] sm:$0xff]  ;;  %v301_v13 = vstv %s495_s4  ;;  %s353_s28 = sshll.u32 %s997_s29, 4  ;;  %s1024_s30 = scalar_lea.hbm %s1095_s3, %s501_s18  ;;  %s1026_s28 = int_to_ptr.vmem [resolvable:$true] %s353_s28 }
  0x5a   : > { %314 = vperm.xlu1 %619, %v305_v1   ;;  %308 = vperm.xlu0 %618, %v303_v2   ;;  %v288_v8 = vld [vmem:[%s984_s27 + $0x10] sm:$0xff]  ;;  %v286_v10 = vld [vmem:[%s984_s27] sm:$0xff]  ;;  %v300_v11 = vand.u32 127, %v299_v6  ;;  %v285_v15 = vld [vmem:[%s978_s21 + $0x18] sm:$0xff]  ;;  %s1032_s19 = scalar_lea.sflag [#allocation4], %s262_s17  ;;  %s676_s1 = scalar_lea.vmem %s1026_s28, 512 }
  0x5b   : > { %v292_v12 = vsub.f32 %v284_v7, %v288_v8  ;;  %v290_v14 = vsub.f32 %v282_v9, %v286_v10  ;;  %v289_v16 = vld [vmem:[%s984_s27 + $0x18] sm:$0xff]  ;;  %v283_v17 = vld [vmem:[%s978_s21 + $0x8] sm:$0xff]  ;;  %p677_p7 = scmp.ne.s32.totalorder %s1026_s28, %s676_s1  ;;  %s809_s11 = smov [#allocation7]  }
  0x5c   : > { %v287_v18 = vld [vmem:[%s984_s27 + $0x8] sm:$0xff]  ;;  %v302_v19 = vadd.s32 %v301_v13, %v300_v11  ;;  %v293_v22 = vsub.f32 %v285_v15, %v289_v16  ;;  %s680_s5 = sshll.u32 %s809_s11, 4  ;;  %s681_s5 = int_to_ptr.vmem [resolvable:$false] %s680_s5 }
  0x5d   : > { %v296_v20 = vmul.f32 %v292_v12, %v292_v12  ;;  %v294_v21 = vmul.f32 %v290_v14, %v290_v14  ;;  %v291_v23 = vsub.f32 %v283_v17, %v287_v18  ;;  %v327_v26 = vld [vmem:[%s997_s29] sm:$0xff]  ;;  %v328_v36 = vld [vmem:[%s997_s29 + $0x8] sm:$0xff]  ;;  %p678_p1 = pnand %p677_p7, %p914_p12  ;;  %s682_s21 = scalar_lea.vmem %s681_s5, 1024 }
  0x5e   : > { %317 = vperm.xlu1 %619, %v306_v4   ;;  %311 = vperm.xlu0 %618, %v304_v5   ;;  %v329_v24 = vld [vmem:[%s997_s29 + $0x10] sm:$0xff]  ;;  %v297_v30 = vmul.f32 %v293_v22, %v293_v22  ;;  %v330_v34 = vld [vmem:[%s997_s29 + $0x18] sm:$0xff]  ;;  %p683_p3 = scmp.lt.s32.totalorder %s1026_s28, %s681_s5  ;;  %p684_p8 = scmp.lt.s32.totalorder %s682_s21, %s676_s1 }
  0x5f   : > { %v295_v31 = vmul.f32 %v291_v23, %v291_v23  ;;  %p679_p6 = pneg %p678_p1 }
  0x60   : > { %p685_p9 = por %p684_p8, %p683_p3 }
  0x62   : > { %p686_p10 = pnand %p685_p9, %p679_p6 }
  0xd5   : > { %v315_v25 = vpop.permute.xlu1 %314  ;;  %v309_v27 = vpop.permute.xlu0 %308 }
  0xd6   : > { %vm321_vm0 = vcmp.lt.s32.totalorder %v302_v19, %v315_v25  ;;  %vm319_vm1 = vcmp.lt.s32.totalorder %v302_v19, %v309_v27 }
  0xd7   : > { %v325_v28 = vsel %vm321_vm0, %v296_v20, 0.0  ;;  %v323_v29 = vsel %vm319_vm1, %v294_v21, 0.0 }
  0xd8   : > { %v333_v32 = vadd.f32 %v329_v24, %v325_v28  ;;  %v331_v33 = vadd.f32 %v327_v26, %v323_v29 }
  0xd9   : > { %v318_v35 = vpop.permute.xlu1 %317  ;;  %v312_v37 = vpop.permute.xlu0 %311 }
  0xda   : > { %337 = vst [vmem:[%s997_s29 + $0x10] sm:$0xff] %v333_v32  ;;  %335 = vst [vmem:[%s997_s29] sm:$0xff] %v331_v33  ;;  %vm322_vm2 = vcmp.lt.s32.totalorder %v302_v19, %v318_v35  ;;  %vm320_vm3 = vcmp.lt.s32.totalorder %v302_v19, %v312_v37 }
  0xdb   : > { %v326_v38 = vsel %vm322_vm2, %v297_v30, 0.0  ;;  %v324_v39 = vsel %vm320_vm3, %v295_v31, 0.0 }
  0xdc   : > { %v334_v40 = vadd.f32 %v330_v34, %v326_v38  ;;  %v332_v41 = vadd.f32 %v328_v36, %v324_v39 }
  0xde   : > { %338 = vst [vmem:[%s997_s29 + $0x18] sm:$0xff] %v334_v40  ;;  %336 = vst [vmem:[%s997_s29 + $0x8] sm:$0xff] %v332_v41 }
  0xdf   : > { %689 = shalt.err (!%p686_p10)
}
  0xe0   : > { %s690_s8 = scalar_lea.hbm %s1024_s30, 512  ;;  %s694_s20 = scalar_lea.hbm %s1095_s3, 1024 }
  0xe1   : > { %p691_p11 = scmp.ne.s32.totalorder %s1024_s30, %s690_s8  ;;  %p695_p4 = scmp.lt.s32.totalorder %s1024_s30, %s1095_s3 }
  0xe2   : > { %p696_p5 = scmp.lt.s32.totalorder %s694_s20, %s690_s8 }
  0xe3   : > { %p692_p13 = pnand %p691_p11, %p914_p12 }
  0xe4   : > { %p697_p7 = por %p696_p5, %p695_p4 }
  0xe5   : > { %p693_p0 = pneg %p692_p13 }
  0xe7   : > { %p698_p1 = pnand %p697_p7, %p693_p0 }
  0xe9   : > { %701 = shalt.err (!%p698_p1)
}
  0xea   : > { %s810_s24 = smov 128   ;;  %s811_s6 = smov 8  }
  0xeb   : > { %508 = dma.vmem_to_hbm [thread:$0]  (%p914_p12), %s1026_s28, 512, %s1024_s30, %s1032_s19, %s810_s24, %s810_s24, %s811_s6  }
  0xec PF: > { %p522_p6 = scmp.ge.s32.totalorder %s800_s22, 2  ;;  %s368_s15 = sand.u32 1, %s760_s12  }
  0xed   : > { %s369_s29 = scalar_lea.sflag [#allocation4], %s368_s15 }
  0xee   : > { %p518_p3 = pnand %p522_p6, %p927_p2 }
  0xf0   : > { %p519_p8 = pneg %p518_p3 }
  0xf2   : > { %755 = dma.done.wait (%p519_p8), %s369_s29, 512  }
  0xf3   : > { %757 = vsyncadd (%p519_p8), %s369_s29, 4294966784  ;;  %s22_s22 = sadd.s32 1, %s800_s22   ;;  %s1118_s4 = sld [smem:[#allocation16_spill]] }
  0xf4   : > { %p19_p9 = scmp.ge.s32.totalorder %s22_s22, 8   ;;  %s1119_s7 = sld [smem:[#allocation11_spill]] }
  0xf5   : > { %s1120_s17 = sld [smem:[#allocation17_spill]]  ;;  %s1125_s12 = smov %s764_s13 }
  0xf6   : > { %s1121_s18 = sld [smem:[#allocation12_spill]]  ;;  %s1126_s13 = smov %s768_s14 }
  0xf7   : > { %s1122_s19 = sld [smem:[#allocation13_spill]]  ;;  %s1128_s15 = smov %s776_s16 }
  0xf8   : > { %s1123_s20 = sld [smem:[#allocation14_spill]]  ;;  %21 = sbr.rel (!%p19_p9) target bundleno = 13 (0xd), region = 97 }
  0xf9   : > { %s1124_s21 = sld [smem:[#allocation15_spill]]  ;;  %s1127_s14 = smov %s1118_s4 }
  0xfa   : > { %s1129_s16 = smov %s1119_s7 }
  0xfd   :  { %374 = vsyncpa [#allocation3], 1 }
  0xfe   :  { %376 = vsyncpa [#allocation3 + $0x1], 1 }
  0xff   :  { %377 = vsyncpa [#allocation6], 1 }
 0x100   :  { %379 = vsyncpa [#allocation6 + $0x1], 1 }
 0x101   :  { %380 = vsyncpa [#allocation4], 1 }
 0x102   :  { %382 = vsyncpa [#allocation4 + $0x1], 1 }

</bundles_post_ra>
